<compile_context>
chip_gen: v6e
topology: v6e:2x2x1
jax: 0.10.0
libtpu: 0.0.40
codegen_flags: <defaults>
</compile_context>

<pallas_src>
import jax
import jax.numpy as jnp
from jax.experimental import pallas as pl
from jax.experimental.pallas import tpu as pltpu


def _round_up(n: int, m: int) -> int:
    return ((n + m - 1) // m) * m


def fcnet_kernel(x_ref, w1_ref, b1_ref, o_ref):
    # x_ref : (TB, 896)  bf16 VMEM (zero-padded feature columns 784..895)
    # w1_ref: (896, 20)  bf16 VMEM (zero-padded rows 784..895) -- resident
    # b1_ref: (1, 20)    f32  VMEM -- resident
    # o_ref : (TB, 20)   f32  VMEM
    x = x_ref[...]
    w = w1_ref[...]
    b = b1_ref[...]

    # fc1: MXU matmul, bf16 inputs, f32 accumulation, bias broadcast over batch.
    h = jnp.dot(x, w, preferred_element_type=jnp.float32) + b

    # relu
    h = jnp.maximum(h, 0.0)

    # dropout1 (p=0.5): identity in eval/inference mode (deterministic).
    # second relu after dropout: no-op (h already >= 0).

    # log_softmax along the feature axis (dim=1), numerically stable.
    m = jnp.max(h, axis=-1, keepdims=True)
    s = h - m
    lse = jnp.log(jnp.sum(jnp.exp(s), axis=-1, keepdims=True))
    o_ref[...] = (s - lse).astype(o_ref.dtype)


def fcnet_forward(x_nchw, w1, b1, *, tb_max=1024):
    """x_nchw: (B, 1, 28, 28) float32 -> (B, 20) float32 log-probs."""
    B = x_nchw.shape[0]
    x2d = x_nchw.reshape(B, -1)                    # flatten(start_dim=1) -> (B, 784)
    in_f, out_f = w1.shape                         # (784, 20)
    assert x2d.shape[1] == in_f == 784

    # Lane-align the contraction dim: 784 -> 896 (= 7 * 128), zero padded.
    in_f_pad = _round_up(in_f, 128)

    # Batch tile: multiple of 16 (bf16 sublane packing), capped so
    # double-buffered input tiles (TB*896*2B*2) stay tiny vs. any VMEM limit.
    TB = min(tb_max, _round_up(B, 16))
    pad_b = _round_up(B, TB)

    # bf16 feed for the HBM-bound x read (and the weight), f32 bias.
    x_p = (jnp.zeros((pad_b, in_f_pad), jnp.bfloat16)
           .at[:B, :in_f].set(x2d.astype(jnp.bfloat16)))
    w_p = (jnp.zeros((in_f_pad, out_f), jnp.bfloat16)
           .at[:in_f, :].set(w1.astype(jnp.bfloat16)))
    b_p = b1.reshape(1, out_f).astype(jnp.float32)

    grid = (pad_b // TB,)

    out = pl.pallas_call(
        fcnet_kernel,
        out_shape=jax.ShapeDtypeStruct((pad_b, out_f), jnp.float32),
        grid_spec=pl.GridSpec(
            grid=grid,
            in_specs=[
                pl.BlockSpec((TB, in_f_pad), lambda i: (i, 0)),   # x: tiled over batch
                pl.BlockSpec((in_f_pad, out_f), lambda i: (0, 0)),  # w1: resident
                pl.BlockSpec((1, out_f), lambda i: (0, 0)),         # b1: resident
            ],
            out_specs=pl.BlockSpec((TB, out_f), lambda i: (i, 0)),
        ),
        compiler_params=pltpu.CompilerParams(
            # batch rows are independent -> shard across v7x's 2 TensorCores.
            dimension_semantics=("parallel",),
            # explicit scoped-VMEM limit (v5e default is 16 MiB); tiles are far
            # below this even double-buffered at TB=1024.
            vmem_limit_bytes=32 << 20,
        ),
    )(x_p, w_p, b_p)

    return out[:B]


def init_params(key):
    """Deterministic parameter init mimicking PyTorch nn.Linear defaults
    (uniform(-1/sqrt(fan_in), 1/sqrt(fan_in)))."""
    k1, k2, k3, k4 = jax.random.split(key, 4)
    bound1 = 1.0 / jnp.sqrt(784.0)
    w1 = jax.random.uniform(k1, (784, 20), jnp.float32, -bound1, bound1)
    b1 = jax.random.uniform(k2, (20,), jnp.float32, -bound1, bound1)
    # fc2 exists in __init__ but is unused by forward(); kept for fidelity.
    bound2 = 1.0 / jnp.sqrt(20.0)
    w2 = jax.random.uniform(k3, (20, 10), jnp.float32, -bound2, bound2)
    b2 = jax.random.uniform(k4, (10,), jnp.float32, -bound2, bound2)
    return w1, b1, w2, b2


if __name__ == "__main__":
    key = jax.random.PRNGKey(0)
    kx, kp = jax.random.split(key)

    # MNIST-like input: batch=2, NCHW (2, 1, 28, 28) -> 784 features.
    # NOTE: at B=2 this is pure launch/DMA overhead territory; the tiling /
    # bf16 / parallel-axis wins only show up at realistic batch sizes
    # (hundreds+ rows per tile). Semantics are identical either way.
    B = 2
    x = jax.random.normal(kx, (B, 1, 28, 28), dtype=jnp.float32)
    w1, b1, w2, b2 = init_params(kp)

    out = fcnet_forward(x, w1, b1)
    out = jax.block_until_ready(out)
    assert out.shape == (B, 20)

    # Reference with the same bf16-input / f32-accum numerics as the kernel.
    x2d = x.reshape(B, -1)
    h = jnp.dot(x2d.astype(jnp.bfloat16), w1.astype(jnp.bfloat16),
                preferred_element_type=jnp.float32) + b1
    h = jnp.maximum(h, 0.0)
    ref_bf16 = jax.nn.log_softmax(h, axis=1)
    assert jnp.allclose(out, ref_bf16, atol=1e-4, rtol=1e-4), (
        jnp.max(jnp.abs(out - ref_bf16)))

    # Loose sanity check against the full-f32 reference (bf16 feed quantizes x/w).
    ref_f32 = jax.nn.log_softmax(jnp.maximum(x2d @ w1 + b1, 0.0), axis=1)
    assert jnp.allclose(out, ref_f32, atol=5e-2, rtol=5e-2)

    print("KERNEL_OK")
</pallas_src>

<mosaic_0001>
module attributes {stable_mosaic.version = 11 : i64} {
  func.func @fcnet_kernel(%arg0: i32, %arg1: memref<16x896xbf16, #tpu.memory_space<vmem>>, %arg2: memref<896x20xbf16, #tpu.memory_space<vmem>>, %arg3: memref<1x20xf32, #tpu.memory_space<vmem>>, %arg4: memref<16x20xf32, #tpu.memory_space<vmem>>) attributes {dimension_semantics = [#tpu.dimension_semantics<parallel>], iteration_bounds = array<i64: 1>, scalar_prefetch = 0 : i64, scratch_operands = 0 : i64, tpu.core_type = #tpu.core_type<tc>, window_params = [{transform_indices = @transform_0, window_bounds = array<i64: 16, 896>}, {pipeline_mode = #tpu.pipeline_mode<synchronous>, transform_indices = @transform_1, window_bounds = array<i64: 896, 20>}, {pipeline_mode = #tpu.pipeline_mode<synchronous>, transform_indices = @transform_2, window_bounds = array<i64: 1, 20>}, {transform_indices = @transform_3, window_bounds = array<i64: 16, 20>}]} {
    %c0 = arith.constant 0 : index
    %c0_0 = arith.constant 0 : index
    %0 = vector.load %arg1[%c0, %c0_0] : memref<16x896xbf16, #tpu.memory_space<vmem>>, vector<16x896xbf16>
    %c0_1 = arith.constant 0 : index
    %c0_2 = arith.constant 0 : index
    %1 = vector.load %arg2[%c0_1, %c0_2] : memref<896x20xbf16, #tpu.memory_space<vmem>>, vector<896x20xbf16>
    %c0_3 = arith.constant 0 : index
    %c0_4 = arith.constant 0 : index
    %2 = vector.load %arg3[%c0_3, %c0_4] : memref<1x20xf32, #tpu.memory_space<vmem>>, vector<1x20xf32>
    %cst = arith.constant dense<0.000000e+00> : vector<16x20xf32>
    %3 = tpu.matmul %0, %1, %cst {dimension_numbers = #tpu.dot_dimension_numbers<[1], [0], [0], [1], [0, 0, 1, 1], [], []>} : vector<16x896xbf16>, vector<896x20xbf16>, vector<16x20xf32> -> vector<16x20xf32>
    %4 = vector.broadcast %2 : vector<1x20xf32> to vector<16x20xf32>
    %5 = arith.addf %3, %4 : vector<16x20xf32>
    %cst_5 = arith.constant 0.000000e+00 : f32
    %6 = vector.broadcast %cst_5 : f32 to vector<16x20xf32>
    %7 = arith.maximumf %5, %6 : vector<16x20xf32>
    %cst_6 = arith.constant dense<0xFF800000> : vector<16xf32>
    %8 = vector.multi_reduction <maximumf>, %7, %cst_6 [1] : vector<16x20xf32> to vector<16xf32>
    %9 = vector.shape_cast %8 : vector<16xf32> to vector<16x1xf32>
    %10 = vector.broadcast %9 : vector<16x1xf32> to vector<16x20xf32>
    %11 = arith.subf %7, %10 : vector<16x20xf32>
    %12 = math.exp %11 : vector<16x20xf32>
    %cst_7 = arith.constant dense<0.000000e+00> : vector<16xf32>
    %13 = vector.multi_reduction <add>, %12, %cst_7 [1] : vector<16x20xf32> to vector<16xf32>
    %14 = vector.shape_cast %13 : vector<16xf32> to vector<16x1xf32>
    %15 = math.log %14 : vector<16x1xf32>
    %16 = vector.broadcast %15 : vector<16x1xf32> to vector<16x20xf32>
    %17 = arith.subf %11, %16 : vector<16x20xf32>
    %c0_8 = arith.constant 0 : index
    %c0_9 = arith.constant 0 : index
    %18 = vector.load %arg4[%c0_8, %c0_9] : memref<16x20xf32, #tpu.memory_space<vmem>>, vector<16x20xf32>
    tpu.vector_store %arg4[%c0_8, %c0_9], %17 {strides = array<i32>} : memref<16x20xf32, #tpu.memory_space<vmem>>, vector<16x20xf32>,
    return
  }
  func.func @transform_0(%arg0: i32) -> (i32, i32) {
    %c0_i32 = arith.constant 0 : i32
    %c0_i32_0 = arith.constant 0 : i32
    return %arg0, %c0_i32 : i32, i32
  }
  func.func @transform_1(%arg0: i32) -> (i32, i32) {
    %c0_i32 = arith.constant 0 : i32
    %c0_i32_0 = arith.constant 0 : i32
    %c0_i32_1 = arith.constant 0 : i32
    return %c0_i32, %c0_i32_0 : i32, i32
  }
  func.func @transform_2(%arg0: i32) -> (i32, i32) {
    %c0_i32 = arith.constant 0 : i32
    %c0_i32_0 = arith.constant 0 : i32
    %c0_i32_1 = arith.constant 0 : i32
    return %c0_i32, %c0_i32_0 : i32, i32
  }
  func.func @transform_3(%arg0: i32) -> (i32, i32) {
    %c0_i32 = arith.constant 0 : i32
    %c0_i32_0 = arith.constant 0 : i32
    return %arg0, %c0_i32 : i32, i32
  }
}

</mosaic_0001>

<bundles_post_ra>
// kernel: tpu_custom_call.1
= control target key start
LH: loop header
LB: loop body
LE: loop exit
PB: predicated region body
PF: predicated region fallthrough
CT: control target
= control target key end

     0   :  { %v984_v36 = vmov 0.0   ;;  %vm985_vm0 = vmmov 0   ;;  %s1210_s0 = inlined_call_operand.vmem [shape: bf16[16,896], index: 0, kind: input, shape index: {}]   ;;  %s1211_s1 = inlined_call_operand.vmem [shape: bf16[896,20], index: 1, kind: input, shape index: {}]   ;;  %s1212_s2 = inlined_call_operand.vmem [shape: f32[1,20], index: 2, kind: input, shape index: {}]   ;;  %s1213_s3 = inlined_call_operand.hbm [shape: f32[16,20], index: 3, kind: output, shape index: {}]  }
   0x1   :  { %v888_v0 = vld [vmem:[%s1211_s1 + $0x78] sm:$0xff]   ;;  %v892_v4 = vld [vmem:[%s1211_s1 + $0x70] sm:$0xff]   ;;  %v896_v8 = vld [vmem:[%s1211_s1 + $0x68] sm:$0xff]  }
   0x2   :  { %v889_v1 = vld [vmem:[%s1211_s1 + $0xf8] sm:$0xff]   ;;  %788 = vmatprep.subr.bf16.mxu0 %v888_v0  ;;  %v893_v5 = vld [vmem:[%s1211_s1 + $0xf0] sm:$0xff]   ;;  %v897_v9 = vld [vmem:[%s1211_s1 + $0xe8] sm:$0xff]  }
   0x3   :  { %v890_v2 = vld [vmem:[%s1211_s1 + $0x38] sm:$0xff]   ;;  %810 = vmatprep.subr.bf16.mxu1 %v889_v1  ;;  %v894_v6 = vld [vmem:[%s1211_s1 + $0x30] sm:$0xff]   ;;  %v898_v10 = vld [vmem:[%s1211_s1 + $0x28] sm:$0xff]  }
   0x4   :  { %v891_v3 = vld [vmem:[%s1211_s1 + $0xb8] sm:$0xff]   ;;  %789 = vmatpush3.bf16.msra.mxu0 %v890_v2  ;;  %v895_v7 = vld [vmem:[%s1211_s1 + $0xb0] sm:$0xff]   ;;  %v899_v11 = vld [vmem:[%s1211_s1 + $0xa8] sm:$0xff]  }
   0x5   :  { %811 = vmatpush3.bf16.msra.mxu1 %v891_v3  ;;  %790 = vmatprep.subr.bf16.mxu0 %v892_v4  ;;  %v900_v12 = vld [vmem:[%s1211_s1 + $0x60] sm:$0xff]   ;;  %v904_v16 = vld [vmem:[%s1211_s1 + $0x58] sm:$0xff]   ;;  %v908_v20 = vld [vmem:[%s1211_s1 + $0x50] sm:$0xff]  }
   0x6   :  { %812 = vmatprep.subr.bf16.mxu1 %v893_v5  ;;  %v901_v13 = vld [vmem:[%s1211_s1 + $0xe0] sm:$0xff]   ;;  %v905_v17 = vld [vmem:[%s1211_s1 + $0xd8] sm:$0xff]   ;;  %v909_v21 = vld [vmem:[%s1211_s1 + $0xd0] sm:$0xff]  }
   0x7   :  { %v902_v14 = vld [vmem:[%s1211_s1 + $0x20] sm:$0xff]   ;;  %v906_v18 = vld [vmem:[%s1211_s1 + $0x18] sm:$0xff]   ;;  %v910_v22 = vld [vmem:[%s1211_s1 + $0x10] sm:$0xff]  }
   0x8   :  { %791 = vmatpush3.bf16.msra.mxu0 %v894_v6  ;;  %v903_v15 = vld [vmem:[%s1211_s1 + $0xa0] sm:$0xff]   ;;  %v907_v19 = vld [vmem:[%s1211_s1 + $0x98] sm:$0xff]   ;;  %v911_v23 = vld [vmem:[%s1211_s1 + $0x90] sm:$0xff]  }
   0x9   :  { %813 = vmatpush3.bf16.msra.mxu1 %v895_v7  ;;  %792 = vmatprep.subr.bf16.mxu0 %v896_v8  ;;  %v912_v24 = vld [vmem:[%s1211_s1 + $0x48] sm:$0xff]   ;;  %v916_v28 = vld [vmem:[%s1211_s1 + $0x40] sm:$0xff]   ;;  %v926_v37 = vld [vmem:[%s1211_s1 + $0x178] sm:$0xff]  }
   0xa   :  { %814 = vmatprep.subr.bf16.mxu1 %v897_v9  ;;  %v913_v25 = vld [vmem:[%s1211_s1 + $0xc8] sm:$0xff]   ;;  %v917_v29 = vld [vmem:[%s1211_s1 + $0xc0] sm:$0xff]   ;;  %v927_v38 = vld [vmem:[%s1211_s1 + $0x138] sm:$0xff]  }
   0xb   :  { %v914_v26 = vld [vmem:[%s1211_s1 + $0x8] sm:$0xff]   ;;  %v918_v30 = vld [vmem:[%s1211_s1] sm:$0xff]   ;;  %v928_v39 = vld [vmem:[%s1211_s1 + $0x1b8] sm:$0xff]  }
   0xc   :  { %793 = vmatpush3.bf16.msra.mxu0 %v898_v10  ;;  %v915_v27 = vld [vmem:[%s1211_s1 + $0x88] sm:$0xff]   ;;  %v919_v31 = vld [vmem:[%s1211_s1 + $0x80] sm:$0xff]   ;;  %v929_v40 = vld [vmem:[%s1211_s1 + $0x170] sm:$0xff]  }
   0xd   :  { %815 = vmatpush3.bf16.msra.mxu1 %v899_v11  ;;  %794 = vmatprep.subr.bf16.mxu0 %v900_v12  ;;  %v920_v32 = vld [vmem:[%s1210_s0] ss:$28 sps:$4 sm:$0xff]   ;;  %v923_v34 = vld [vmem:[%s1210_s0 + $0x8] ss:$28 sps:$4 sm:$0xff]   ;;  %v930_v41 = vld [vmem:[%s1211_s1 + $0x130] sm:$0xff]  }
   0xe   :  { %816 = vmatprep.subr.bf16.mxu1 %v901_v13  ;;  %v922_v33 = vld [vmem:[%s1210_s0 + $0x4] ss:$28 sps:$4 sm:$0xff]   ;;  %v925_v35 = vld [vmem:[%s1210_s0 + $0xc] ss:$28 sps:$4 sm:$0xff]   ;;  %v931_v42 = vld [vmem:[%s1211_s1 + $0x1b0] sm:$0xff]  }
   0xf   :  { %547 = vmatprep.mubr.bf16.mxu0 %v922_v33  ;;  %588 = vmatprep.mubr.bf16.mxu1 %v925_v35  ;;  %v932_v43 = vld [vmem:[%s1211_s1 + $0x168] sm:$0xff]   ;;  %v935_v46 = vld [vmem:[%s1211_s1 + $0x160] sm:$0xff]   ;;  %v938_v49 = vld [vmem:[%s1211_s1 + $0x158] sm:$0xff]  }
  0x10   :  { %795 = vmatpush3.bf16.msra.mxu0 %v902_v14  ;;  %v933_v44 = vld [vmem:[%s1211_s1 + $0x128] sm:$0xff]   ;;  %v936_v47 = vld [vmem:[%s1211_s1 + $0x120] sm:$0xff]   ;;  %v939_v50 = vld [vmem:[%s1211_s1 + $0x118] sm:$0xff]  }
  0x11   :  { %817 = vmatpush3.bf16.msra.mxu1 %v903_v15  ;;  %796 = vmatprep.subr.bf16.mxu0 %v904_v16  ;;  %v934_v45 = vld [vmem:[%s1211_s1 + $0x1a8] sm:$0xff]   ;;  %v937_v48 = vld [vmem:[%s1211_s1 + $0x1a0] sm:$0xff]   ;;  %v940_v51 = vld [vmem:[%s1211_s1 + $0x198] sm:$0xff]  }
  0x12   :  { %818 = vmatprep.subr.bf16.mxu1 %v905_v17  ;;  %v941_v52 = vld [vmem:[%s1211_s1 + $0x150] sm:$0xff]   ;;  %v944_v55 = vld [vmem:[%s1211_s1 + $0x148] sm:$0xff]   ;;  %v947_v58 = vld [vmem:[%s1211_s1 + $0x140] sm:$0xff]  }
  0x13   :  { %v942_v53 = vld [vmem:[%s1211_s1 + $0x110] sm:$0xff]   ;;  %v945_v56 = vld [vmem:[%s1211_s1 + $0x108] sm:$0xff]  }
  0x14   :  { %797 = vmatpush3.bf16.msra.mxu0 %v906_v18  ;;  %v943_v54 = vld [vmem:[%s1211_s1 + $0x190] sm:$0xff]   ;;  %v946_v57 = vld [vmem:[%s1211_s1 + $0x188] sm:$0xff]  }
  0x15   :  { %819 = vmatpush3.bf16.msra.mxu1 %v907_v19  ;;  %798 = vmatprep.subr.bf16.mxu0 %v908_v20  ;;  %v952_v59 = vld [vmem:[%s1210_s0 + $0x14] ss:$28 sps:$4 sm:$0xff]  }
  0x16   :  { %820 = vmatprep.subr.bf16.mxu1 %v909_v21 }
  0x18   :  { %799 = vmatpush3.bf16.msra.mxu0 %v910_v22 }
  0x19   :  { %821 = vmatpush3.bf16.msra.mxu1 %v911_v23  ;;  %800 = vmatprep.subr.bf16.mxu0 %v912_v24 }
  0x1a   :  { %822 = vmatprep.subr.bf16.mxu1 %v913_v25 }
  0x1c   :  { %801 = vmatpush3.bf16.msra.mxu0 %v914_v26 }
  0x1d   :  { %823 = vmatpush3.bf16.msra.mxu1 %v915_v27  ;;  %802 = vmatprep.subr.bf16.mxu0 %v916_v28 }
  0x1e   :  { %824 = vmatprep.subr.bf16.mxu1 %v917_v29 }
  0x20   :  { %803 = vmatpush3.bf16.msra.mxu0 %v918_v30 }
  0x21   :  { %825 = vmatpush3.bf16.msra.mxu1 %v919_v31  ;;  %832 = vmatprep.subr.bf16.mxu0 %v926_v37 }
  0x22   :  { %863 = vmatprep.subr.bf16.mxu1 %v984_v36 }
  0x23   :  { %548 = vmatmul.mubr.bf16.vlgmr.msra.gmra.mxu0 %v920_v32 }
  0x24   :  { %589 = vmatmul.mubr.bf16.vlgmr.msra.gmra.mxu1 %v923_v34  ;;  %833 = vmatpush3.bf16.msra.mxu0 %v927_v38 }
  0x25   :  { %879 = vmatprep.mubr.msk.bf16.mxu1 %vm985_vm0, %v984_v36  ;;  %864 = vmatpush3.bf16.msra.mxu1 %v928_v39 }
  0x26   :  { %834 = vmatprep.subr.bf16.mxu0 %v929_v40  ;;  %865 = vmatprep.subr.bf16.mxu1 %v984_v36 }
  0x27   :  { %629 = vmatprep.mubr.bf16.mxu0 %v952_v59 }
  0x28   :  { %835 = vmatpush3.bf16.msra.mxu0 %v930_v41 }
  0x29   :  { %866 = vmatpush3.bf16.msra.mxu1 %v931_v42  ;;  %836 = vmatprep.subr.bf16.mxu0 %v932_v43 }
  0x2a   :  { %867 = vmatprep.subr.bf16.mxu1 %v984_v36 }
  0x2c   :  { %837 = vmatpush3.bf16.msra.mxu0 %v933_v44 }
  0x2d   :  { %868 = vmatpush3.bf16.msra.mxu1 %v934_v45  ;;  %838 = vmatprep.subr.bf16.mxu0 %v935_v46 }
  0x2e   :  { %869 = vmatprep.subr.bf16.mxu1 %v984_v36 }
  0x30   :  { %839 = vmatpush3.bf16.msra.mxu0 %v936_v47 }
  0x31   :  { %870 = vmatpush3.bf16.msra.mxu1 %v937_v48  ;;  %840 = vmatprep.subr.bf16.mxu0 %v938_v49 }
  0x32   :  { %871 = vmatprep.subr.bf16.mxu1 %v984_v36 }
  0x34   :  { %841 = vmatpush3.bf16.msra.mxu0 %v939_v50 }
  0x35   :  { %872 = vmatpush3.bf16.msra.mxu1 %v940_v51  ;;  %842 = vmatprep.subr.bf16.mxu0 %v941_v52 }
  0x36   :  { %873 = vmatprep.subr.bf16.mxu1 %v984_v36 }
  0x38   :  { %843 = vmatpush3.bf16.msra.mxu0 %v942_v53 }
  0x39   :  { %874 = vmatpush3.bf16.msra.mxu1 %v943_v54  ;;  %844 = vmatprep.subr.bf16.mxu0 %v944_v55 }
  0x3a   :  { %875 = vmatprep.subr.bf16.mxu1 %v984_v36 }
  0x3b   :  { %8 = vsyncpa [#allocation3], 0  ;;  %v948_v60 = vld [vmem:[%s1211_s1 + $0x100] sm:$0xff]   ;;  %v950_v62 = vld [vmem:[%s1210_s0 + $0x10] ss:$28 sps:$4 sm:$0xff]   ;;  %vm681_vm1 = vcmask 162816  }
  0x3c   :  { %845 = vmatpush3.bf16.msra.mxu0 %v945_v56  ;;  %v949_v61 = vld [vmem:[%s1211_s1 + $0x180] sm:$0xff]   ;;  %v953_v63 = vld [vmem:[%s1210_s0 + $0x18] ss:$28 sps:$4 sm:$0xff]   ;;  %s986_s0 = smov [#allocation2]  }
  0x3d   :  { %876 = vmatpush3.bf16.msra.mxu1 %v946_v57  ;;  %846 = vmatprep.subr.bf16.mxu0 %v947_v58  ;;  %v724_v7 = vld [vmem:[%s1212_s2] ss:$0 sm:$0xff]  ;;  %s713_s2 = sshll.u32 %s986_s0, 4  ;;  %s714_s2 = int_to_ptr.vmem [resolvable:$true] %s713_s2 }
  0x3e   :  { %877 = vmatprep.subr.bf16.mxu1 %v984_v36  ;;  %s962_s4 = scalar_lea.vmem %s714_s2, 256  ;;  %p967_p1 = scmp.lt.s32.totalorder %s714_s2, %s714_s2 }
  0x3f   :  { %p963_p0 = scmp.ne.s32.totalorder %s714_s2, %s962_s4  ;;  %p968_p2 = scmp.lt.s32.totalorder %s962_s4, %s962_s4 }
  0x40   :  { %847 = vmatpush3.bf16.msra.mxu0 %v948_v60 }
  0x41   :  { %878 = vmatpush3.bf16.msra.mxu1 %v949_v61  ;;  %p969_p3 = por %p968_p2, %p967_p1 }
  0x43   :  { %630 = vmatmul.mubr.bf16.vlgmr.msra.gmra.mxu0 %v950_v62  ;;  %p970_p4 = pnand %p969_p3, %p963_p0 }
  0x44   :  { %880 = vmatmul.mubr.bf16.vlgmr.msra.gmra.mxu1 %v953_v63 }
  0xe3   :  { %v804_v0 = vpop.f32.mrf.mxu0 }
  0xe4   :  { %v826_v1 = vpop.f32.mrf.mxu1 }
  0xe5   :  { %v805_v2 = vpop.f32.mrf.mxu0 }
  0xe6   :  { %v827_v3 = vpop.f32.mrf.mxu1  ;;  %v806_v5 = vadd.f32 %v805_v2, %v804_v0 }
  0xe7   :  { %v807_v4 = vpop.f32.mrf.mxu0  ;;  %v828_v10 = vadd.f32 %v827_v3, %v826_v1 }
  0xe8   :  { %v829_v6 = vpop.f32.mrf.mxu1  ;;  %v550_v9 = vadd.f32 %v806_v5, %v724_v7 }
  0xe9   :  { %v808_v8 = vpop.f32.mrf.mxu0 }
  0xea   :  { %v809_v11 = vadd.f32 %v808_v8, %v807_v4  ;;  %v830_v12 = vpop.f32.mrf.mxu1  ;;  %v591_v16 = vadd.f32 %v828_v10, %v550_v9 }
  0xeb   :  { %v831_v18 = vadd.f32 %v830_v12, %v829_v6 }
  0xec   :  { %v553_v17 = vadd.f32 %v809_v11, %v724_v7 }
  0xee   :  { %v594_v25 = vadd.f32 %v831_v18, %v553_v17 }
 0x103   :  { %v848_v13 = vpop.f32.mrf.mxu0 }
 0x104   :  { %v672_v14 = vpop.f32.mrf.mxu1 }
 0x105   :  { %v849_v15 = vpop.f32.mrf.mxu0 }
 0x106   :  { %v850_v19 = vadd.f32 %v849_v15, %v848_v13  ;;  %v881_v20 = vpop.f32.mrf.mxu1 }
 0x107   :  { %v851_v21 = vpop.f32.mrf.mxu0 }
 0x108   :  { %v632_v22 = vadd.f32 %v850_v19, %v591_v16  ;;  %v675_v23 = vpop.f32.mrf.mxu1 }
 0x109   :  { %v852_v24 = vpop.f32.mrf.mxu0 }
 0x10a   :  { %v853_v26 = vadd.f32 %v852_v24, %v851_v21  ;;  %v882_v27 = vpop.f32.mrf.mxu1  ;;  %v673_v28 = vadd.f32 %v672_v14, %v632_v22 }
 0x10c   :  { %v635_v29 = vadd.f32 %v853_v26, %v594_v25  ;;  %v679_v30 = vmax.f32 %v673_v28, 0.0 }
 0x10e   :  { %v682_v31 = vsel %vm681_vm1, %v679_v30, -inf  ;;  %v676_v32 = vadd.f32 %v675_v23, %v635_v29 }
 0x10f   :  { %683 = vmax.xlane.f32.xlu0 %v682_v31 }
 0x110   :  { %v680_v33 = vmax.f32 %v676_v32, 0.0 }
 0x112   :  { %v685_v34 = vsel %vm681_vm1, %v680_v33, -inf }
 0x113   :  { %686 = vmax.xlane.f32.xlu0 %v685_v34 }
 0x198   :  { %v684_v35 = vpop.xlane.xlu0 %683 }
 0x199   :  { %v688_v36 = vsub.f32 %v679_v30, %v684_v35 }
 0x19b   :  { %v690_v37 = vmul.f32 1.442695, %v688_v36 }
 0x19c   :  { %v687_v38 = vpop.xlane.xlu0 %686 }
 0x19d   :  { %954 = vpow2.f32 %v690_v37  ;;  %v689_v39 = vsub.f32 %v680_v33, %v687_v38 }
 0x19f   :  { %v692_v40 = vmul.f32 1.442695, %v689_v39 }
 0x1a1   :  { %956 = vpow2.f32 %v692_v40 }
 0x1aa   :  { %v955_v41 = vpop.eup %954 }
 0x1ab   :  { %v694_v42 = vsel %vm681_vm1, %v955_v41, 0.0 }
 0x1ac   :  { %695 = vadd.xlane.f32.xlu1 %v694_v42 }
 0x1ae   :  { %v957_v43 = vpop.eup %956 }
 0x1af   :  { %v697_v44 = vsel %vm681_vm1, %v957_v43, 0.0 }
 0x1b0   :  { %698 = vadd.xlane.f32.xlu1 %v697_v44 }
 0x235   :  { %v696_v45 = vpop.xlane.xlu1 %695 }
 0x236   :  { %958 = vlog2.f32 %v696_v45 }
 0x239   :  { %v699_v46 = vpop.xlane.xlu1 %698 }
 0x23a   :  { %960 = vlog2.f32 %v699_v46 }
 0x243   :  { %v959_v47 = vpop.eup %958 }
 0x244   :  { %v701_v48 = vmul.f32 0.6931472, %v959_v47 }
 0x246   :  { %v704_v49 = vsub.f32 %v688_v36, %v701_v48 }
 0x247   :  { %v961_v50 = vpop.eup %960 }
 0x248   :  { %706 = vst.msk [vmem:[#allocation2] sm:$0xff] %vm681_vm1, %v704_v49  ;;  %v703_v51 = vmul.f32 0.6931472, %v961_v50 }
 0x24a   :  { %v705_v52 = vsub.f32 %v689_v39, %v703_v51 }
 0x24c   :  { %707 = vst.msk [vmem:[#allocation2 + $0x8] sm:$0xff] %vm681_vm1, %v705_v52 }
 0x24d   :  { %973 = shalt.err (!%p970_p4)
}
 0x24e   :  { %s987_s5 = smov 128   ;;  %s988_s6 = smov 8  }
 0x24f   :  { %719 = dma.vmem_to_hbm [thread:$0]  %s714_s2, 256, %s1213_s3, [#allocation3], %s987_s5, %s987_s5, %s988_s6  }
 0x250   :  { %982 = dma.done.wait [#allocation3], 256  }
 0x251   :  { %983 = vsyncadd [#allocation3], 4294967040 }
 0x252   :  { %723 = vsyncpa [#allocation3], 1 }

</bundles_post_ra>
